<compile_context>
chip_gen: v5e
topology: v5e:2x2
jax: 0.10.0
libtpu: 0.0.40
codegen_flags: <defaults>
</compile_context>

<pallas_src>
import functools
import math

import jax
import jax.numpy as jnp
from jax.experimental import pallas as pl
from jax.experimental.pallas import tpu as pltpu


# ----------------------------------------------------------------------------------
# Kernel A: Conv2d(3,16,3,s=1,p=1) + ReLU + MaxPool2d(2,2) as one MXU matmul
# ----------------------------------------------------------------------------------
def _conv_relu_pool_kernel(p_ref, w_ref, b_ref, o_ref):
    # p_ref: (R, 128)  rows=(n,y',x'), K=(q, ci, dy, dx) zero-padded 108->128
    # w_ref: (128, 64) block-diagonal conv weights, lanes=(q, co)
    # b_ref: (1, 64)   conv bias tiled over q
    y = jnp.dot(p_ref[...], w_ref[...], preferred_element_type=jnp.float32) + b_ref[...]
    # 2x2 max-pool = max over the 4 quadrant groups of 16 lanes
    m = jnp.maximum(jnp.maximum(y[:, 0:16], y[:, 16:32]),
                    jnp.maximum(y[:, 32:48], y[:, 48:64]))
    o_ref[...] = jnp.maximum(m, 0.0)                      # ReLU


def _im2col_pool_patches(x, oh, ow):
    """(N,3,H,W) -> (N*oh*ow, 128) patch matrix; K = (quadrant, ci, dy, dx) padded to 128."""
    n, cin, h, w = x.shape
    xp = jnp.pad(x, ((0, 0), (0, 0), (1, 1), (1, 1)))                 # conv padding=1
    taps = [xp[:, :, dy:dy + h, dx:dx + w] for dy in range(3) for dx in range(3)]
    pat = jnp.stack(taps, axis=2)                                     # (n, cin, 9, h, w)
    pat = pat.reshape(n, cin * 9, oh, 2, ow, 2)                       # h->(y',py), w->(x',px)
    pat = pat.transpose(0, 2, 4, 3, 5, 1)                             # (n, y', x', py, px, cin*9)
    pat = pat.reshape(n * oh * ow, 4 * cin * 9)                       # K = q*27 + (ci,dy,dx)
    return jnp.pad(pat, ((0, 0), (0, 128 - 4 * cin * 9)))             # (rows, 128)


def _pick_images_per_step(n, ohow):
    """Several images per grid step (amortize ~0.35us/step), but keep >=2 parallel steps."""
    max_bn = max(1, 512 // ohow)
    best = 1
    for d in range(1, n + 1):
        if n % d == 0 and d <= max_bn and (n // d >= 2 or n == 1):
            best = d
    return best


def conv_relu_pool(x, wblk, bias64, oh, ow):
    """x: (N,3,H,W) f32 -> (N, oh*ow*16) f32 feature matrix (lane-dense after reshape)."""
    n = x.shape[0]
    cout = 16
    rows = n * oh * ow
    patches = _im2col_pool_patches(x, oh, ow)
    bn = _pick_images_per_step(n, oh * ow)
    r = bn * oh * ow

    flops = 2 * rows * 128 * 64
    bytes_acc = int(patches.size * 4 + wblk.size * 4 + bias64.size * 4 + rows * cout * 4)

    out = pl.pallas_call(
        _conv_relu_pool_kernel,
        out_shape=jax.ShapeDtypeStruct((rows, cout), jnp.float32),
        grid=(rows // r,),
        in_specs=[
            pl.BlockSpec((r, 128), lambda i: (i, 0)),          # patch rows for this block
            pl.BlockSpec((128, 4 * cout), lambda i: (0, 0)),   # conv weights, resident
            pl.BlockSpec((1, 4 * cout), lambda i: (0, 0)),     # bias, resident
        ],
        out_specs=pl.BlockSpec((r, cout), lambda i: (i, 0)),
        compiler_params=pltpu.CompilerParams(dimension_semantics=("parallel",)),
        cost_estimate=pl.CostEstimate(flops=int(flops), transcendentals=0,
                                      bytes_accessed=bytes_acc),
    )(patches, wblk, bias64)
    # rows are (n, y', x') with co on lanes -> contiguous (free) reshape to (N, F)
    return out.reshape(n, oh * ow * cout)


# ----------------------------------------------------------------------------------
# Kernel B: 8 classifier heads fused into 2 grid steps (4 heads / step), bf16 weights
# ----------------------------------------------------------------------------------
def _fused_heads_kernel(x_ref, w1_ref, b1_ref, w2_ref, b2_ref, o_ref, *, hp):
    xb = x_ref[...].astype(jnp.bfloat16)
    hid = jnp.dot(xb, w1_ref[...], preferred_element_type=jnp.float32) + b1_ref[...]
    hid = jnp.maximum(hid, 0.0).astype(jnp.bfloat16)                   # (N, hp*128)
    b2 = b2_ref[...]
    outs = []
    for h in range(hp):                                                # short, bounded unroll
        sl = slice(h * 128, (h + 1) * 128)
        outs.append(jnp.dot(hid[:, sl], w2_ref[h],
                            preferred_element_type=jnp.float32) + b2[:, sl])
    o_ref[...] = jnp.concatenate(outs, axis=1)                         # one lane-dense store


def fused_heads(xf, w1, b1, w2, b2, heads_per_step=4):
    """xf: (N,F) f32. w1: (F, 8*128) bf16, b1: (1, 8*128) f32, w2: (8,128,128) bf16,
    b2: (1, 8*128) f32.  Returns lane-dense (N, 8*128) f32 logits."""
    n, f = xf.shape
    nh = w2.shape[0]
    hp = heads_per_step
    assert nh % hp == 0

    flops = 2 * n * f * nh * 128 + 2 * n * 128 * 128 * nh
    bytes_acc = int(xf.size * 4 + w1.size * 2 + b1.size * 4 + w2.size * 2 +
                    b2.size * 4 + n * nh * 128 * 4)

    return pl.pallas_call(
        functools.partial(_fused_heads_kernel, hp=hp),
        out_shape=jax.ShapeDtypeStruct((n, nh * 128), jnp.float32),
        grid=(nh // hp,),
        in_specs=[
            pl.BlockSpec((n, f), lambda g: (0, 0)),             # activations resident
            pl.BlockSpec((f, hp * 128), lambda g: (0, g)),      # W1 column block (bf16)
            pl.BlockSpec((1, hp * 128), lambda g: (0, g)),
            pl.BlockSpec((hp, 128, 128), lambda g: (g, 0, 0)),  # W2 for this head group (bf16)
            pl.BlockSpec((1, hp * 128), lambda g: (0, g)),
        ],
        out_specs=pl.BlockSpec((n, hp * 128), lambda g: (0, g)),
        compiler_params=pltpu.CompilerParams(dimension_semantics=("parallel",)),
        cost_estimate=pl.CostEstimate(flops=int(flops), transcendentals=0,
                                      bytes_accessed=bytes_acc),
    )(xf, w1, b1, w2, b2)


# ----------------------------------------------------------------------------------
# Parameters + model wrapper
# ----------------------------------------------------------------------------------
def _uniform(key, shape, bound):
    return jax.random.uniform(key, shape, jnp.float32, -bound, bound)


class LicensePlateClassifierPallas:
    HEAD_PAD = 128  # per-head lane-padded logit width (all out_dims <= 128)
    COUT = 16

    def __init__(self, key, input_size=16, prov_num=38, alpha_num=25, ad_num=35):
        assert input_size % 2 == 0
        self.input_size = input_size
        self.oh = self.ow = input_size // 2
        self.flattened_size = self.COUT * self.oh * self.ow
        self.out_dims = [prov_num, alpha_num] + [ad_num] * 6
        nh = len(self.out_dims)
        assert max(self.out_dims) <= self.HEAD_PAD

        keys = jax.random.split(key, 2 + 4 * nh)

        # --- features: Conv2d(3, 16, 3, padding=1) -> block-diagonal MXU weight ---
        cbound = 1.0 / math.sqrt(3 * 3 * 3)
        conv_w = _uniform(keys[0], (self.COUT, 3, 3, 3), cbound)   # torch (cout,cin,kh,kw)
        conv_b = _uniform(keys[1], (self.COUT,), cbound)
        w27t = conv_w.reshape(self.COUT, 27).T                     # (27, 16), rows=(ci,dy,dx)
        wblk = jnp.zeros((128, 4 * self.COUT), jnp.float32)
        for q in range(4):                                         # one diag block per pool quadrant
            wblk = wblk.at[q * 27:(q + 1) * 27, q * self.COUT:(q + 1) * self.COUT].set(w27t)
        self.wblk = wblk                                           # (128, 64)
        self.bias64 = jnp.tile(conv_b, 4).reshape(1, 4 * self.COUT)

        # --- 8 heads, fused + lane-padded ONCE here; W1/W2 in bf16 (f32 accumulate) ---
        f = self.flattened_size
        w1_l, b1_l, w2_l, b2_l = [], [], [], []
        for i, od in enumerate(self.out_dims):
            k1, k2, k3, k4 = keys[2 + 4 * i: 6 + 4 * i]
            bnd1 = 1.0 / math.sqrt(f)
            bnd2 = 1.0 / math.sqrt(128)
            w1_l.append(_uniform(k1, (f, 128), bnd1))
            b1_l.append(_uniform(k2, (1, 128), bnd1))
            w2 = jnp.zeros((128, self.HEAD_PAD), jnp.float32).at[:, :od].set(
                _uniform(k3, (128, od), bnd2))
            b2 = jnp.zeros((1, self.HEAD_PAD), jnp.float32).at[:, :od].set(
                _uniform(k4, (1, od), bnd2))
            w2_l.append(w2)
            b2_l.append(b2)
        self.w1 = jnp.concatenate(w1_l, axis=1).astype(jnp.bfloat16)   # (F, 8*128) bf16
        self.b1 = jnp.concatenate(b1_l, axis=1)                        # (1, 8*128) f32
        self.w2 = jnp.stack(w2_l, axis=0).astype(jnp.bfloat16)         # (8, 128, 128) bf16
        self.b2 = jnp.concatenate(b2_l, axis=1)                        # (1, 8*128) f32

    def forward(self, x):
        feat = conv_relu_pool(x, self.wblk, self.bias64, self.oh, self.ow)   # (N, F)
        logits = fused_heads(feat, self.w1, self.b1, self.w2, self.b2)       # (N, 8*128)
        return [logits[:, i * self.HEAD_PAD: i * self.HEAD_PAD + od]
                for i, od in enumerate(self.out_dims)]                       # [out1..out8]


# ----------------------------------------------------------------------------------
if __name__ == "__main__":
    key = jax.random.PRNGKey(0)
    kx, kp = jax.random.split(key)

    N, INPUT_SIZE = 2, 16                                   # flattened_size = 1024
    x = jax.random.normal(kx, (N, 3, INPUT_SIZE, INPUT_SIZE), jnp.float32)

    model = LicensePlateClassifierPallas(kp, input_size=INPUT_SIZE)
    outs = model.forward(x)
    for o in outs:
        jax.block_until_ready(o)
    print("KERNEL_OK")
</pallas_src>

<mosaic_0001>
module attributes {stable_mosaic.version = 11 : i64} {
  func.func @_conv_relu_pool_kernel(%arg0: i32, %arg1: memref<64x128xf32, #tpu.memory_space<vmem>>, %arg2: memref<128x64xf32, #tpu.memory_space<vmem>>, %arg3: memref<1x64xf32, #tpu.memory_space<vmem>>, %arg4: memref<64x16xf32, #tpu.memory_space<vmem>>) attributes {dimension_semantics = [#tpu.dimension_semantics<parallel>], iteration_bounds = array<i64: 2>, scalar_prefetch = 0 : i64, scratch_operands = 0 : i64, tpu.core_type = #tpu.core_type<tc>, window_params = [{transform_indices = @transform_0, window_bounds = array<i64: 64, 128>}, {pipeline_mode = #tpu.pipeline_mode<synchronous>, transform_indices = @transform_1, window_bounds = array<i64: 128, 64>}, {pipeline_mode = #tpu.pipeline_mode<synchronous>, transform_indices = @transform_2, window_bounds = array<i64: 1, 64>}, {transform_indices = @transform_3, window_bounds = array<i64: 64, 16>}]} {
    %c0 = arith.constant 0 : index
    %c0_0 = arith.constant 0 : index
    %0 = vector.load %arg1[%c0, %c0_0] : memref<64x128xf32, #tpu.memory_space<vmem>>, vector<64x128xf32>
    %c0_1 = arith.constant 0 : index
    %c0_2 = arith.constant 0 : index
    %1 = vector.load %arg2[%c0_1, %c0_2] : memref<128x64xf32, #tpu.memory_space<vmem>>, vector<128x64xf32>
    %cst = arith.constant dense<0.000000e+00> : vector<64x64xf32>
    %2 = tpu.matmul %0, %1, %cst {dimension_numbers = #tpu.dot_dimension_numbers<[1], [0], [0], [1], [0, 0, 1, 1], [], []>} : vector<64x128xf32>, vector<128x64xf32>, vector<64x64xf32> -> vector<64x64xf32>
    %c0_3 = arith.constant 0 : index
    %c0_4 = arith.constant 0 : index
    %3 = vector.load %arg3[%c0_3, %c0_4] : memref<1x64xf32, #tpu.memory_space<vmem>>, vector<1x64xf32>
    %4 = vector.broadcast %3 : vector<1x64xf32> to vector<64x64xf32>
    %5 = arith.addf %2, %4 : vector<64x64xf32>
    %6 = vector.extract_strided_slice %5 {offsets = [0, 0], sizes = [64, 16], strides = [1, 1]} : vector<64x64xf32> to vector<64x16xf32>
    %7 = vector.extract_strided_slice %5 {offsets = [0, 16], sizes = [64, 16], strides = [1, 1]} : vector<64x64xf32> to vector<64x16xf32>
    %8 = arith.maximumf %6, %7 : vector<64x16xf32>
    %9 = vector.extract_strided_slice %5 {offsets = [0, 32], sizes = [64, 16], strides = [1, 1]} : vector<64x64xf32> to vector<64x16xf32>
    %10 = vector.extract_strided_slice %5 {offsets = [0, 48], sizes = [64, 16], strides = [1, 1]} : vector<64x64xf32> to vector<64x16xf32>
    %11 = arith.maximumf %9, %10 : vector<64x16xf32>
    %12 = arith.maximumf %8, %11 : vector<64x16xf32>
    %cst_5 = arith.constant 0.000000e+00 : f32
    %13 = vector.broadcast %cst_5 : f32 to vector<64x16xf32>
    %14 = arith.maximumf %12, %13 : vector<64x16xf32>
    %c0_6 = arith.constant 0 : index
    %c0_7 = arith.constant 0 : index
    %15 = vector.load %arg4[%c0_6, %c0_7] : memref<64x16xf32, #tpu.memory_space<vmem>>, vector<64x16xf32>
    tpu.vector_store %arg4[%c0_6, %c0_7], %14 {strides = array<i32>} : memref<64x16xf32, #tpu.memory_space<vmem>>, vector<64x16xf32>,
    return
  }
  func.func @transform_0(%arg0: i32) -> (i32, i32) {
    %c0_i32 = arith.constant 0 : i32
    %c0_i32_0 = arith.constant 0 : i32
    return %arg0, %c0_i32 : i32, i32
  }
  func.func @transform_1(%arg0: i32) -> (i32, i32) {
    %c0_i32 = arith.constant 0 : i32
    %c0_i32_0 = arith.constant 0 : i32
    %c0_i32_1 = arith.constant 0 : i32
    return %c0_i32, %c0_i32_0 : i32, i32
  }
  func.func @transform_2(%arg0: i32) -> (i32, i32) {
    %c0_i32 = arith.constant 0 : i32
    %c0_i32_0 = arith.constant 0 : i32
    %c0_i32_1 = arith.constant 0 : i32
    return %c0_i32, %c0_i32_0 : i32, i32
  }
  func.func @transform_3(%arg0: i32) -> (i32, i32) {
    %c0_i32 = arith.constant 0 : i32
    %c0_i32_0 = arith.constant 0 : i32
    return %arg0, %c0_i32 : i32, i32
  }
}

</mosaic_0001>

<bundles_post_ra>
// kernel: tpu_custom_call.1
= control target key start
LH: loop header
LB: loop body
LE: loop exit
PB: predicated region body
PF: predicated region fallthrough
CT: control target
= control target key end

     0   :  { %s496_s12 = smov 0   ;;  %s591_s0 = inlined_call_operand.vmem [shape: f32[128,128], index: 0, kind: input, shape index: {}]   ;;  %s592_s1 = inlined_call_operand.vmem [shape: f32[128,64], index: 1, kind: input, shape index: {}]   ;;  %s593_s2 = inlined_call_operand.vmem [shape: f32[1,64], index: 2, kind: input, shape index: {}]   ;;  %s594_s3 = inlined_call_operand.vmem [shape: f32[128,16], index: 3, kind: output, shape index: {}]  }
   0x1 LB: > { %s396_s13 = sadd.s32 4294967295, %s472_s12   ;;  %p400_p0 = scmp.ge.s32.totalorder %s472_s12, 1  ;;  %s472_s12 = sphi %s496_s12, %s13_s12  }
   0x2   : > { %p138_p1 = scmp.lt.s32.totalorder %s472_s12, 3 }
   0x4   : > { %p139_p2 = pnand %p400_p0, %p138_p1 }
   0x5   : > { %s401_s30 = sshll.u32 (!%p139_p2), %s396_s13, 3  ;;  %s474_s27 = smov (!%p139_p2), 112  }
   0x6   : > { %142 = sbr.rel (%p139_p2) target bundleno = 425 (0x1a9), region = 32  ;;  %p163_p3 = scmp.lt.s32.totalorder (!%p139_p2), %s401_s30, 15 }
   0x7   : > { %s475_s28 = smov (!%p139_p2), 96  }
   0xb   : > { %v197_v0 = vld [vmem:[%s592_s1 + $0x78] sm:$0xff]  ;;  %v196_v1 = vld [vmem:[%s592_s1 + $0x70] sm:$0xff]  ;;  %v195_v2 = vld [vmem:[%s592_s1 + $0x68] sm:$0xff]  ;;  %s596_s30 = smov (!%p163_p3, %s401_s30), 15  ;;  %vm331_vm0 = vcmask 130048  }
   0xc   : > { %202 = vmatpush.msra.mxu0 %v197_v0  ;;  %407 = vmatpush.msra.mxu1 %v197_v0  ;;  %v194_v3 = vld [vmem:[%s592_s1 + $0x60] sm:$0xff]  ;;  %v193_v4 = vld [vmem:[%s592_s1 + $0x58] sm:$0xff]  ;;  %v192_v5 = vld [vmem:[%s592_s1 + $0x50] sm:$0xff]  ;;  %s402_s15 = sshll.u32 %s596_s30, 3 }
   0xd   : > { %408 = vmatpush.msra.mxu2 %v197_v0  ;;  %409 = vmatpush.msra.mxu3 %v197_v0  ;;  %v191_v6 = vld [vmem:[%s592_s1 + $0x48] sm:$0xff]  ;;  %v190_v7 = vld [vmem:[%s592_s1 + $0x40] sm:$0xff]  ;;  %v189_v8 = vld [vmem:[%s592_s1 + $0x38] sm:$0xff]  ;;  %s166_s22 = scalar_lea.vmem %s591_s0, %s402_s15  ;;  %s570_s5 = scalar_lea.vmem %s594_s3, %s402_s15 }
   0xe   : > { %203 = vmatpush.msra.mxu0 %v196_v1  ;;  %410 = vmatpush.msra.mxu1 %v196_v1  ;;  %v188_v9 = vld [vmem:[%s592_s1 + $0x30] sm:$0xff]  ;;  %v187_v10 = vld [vmem:[%s592_s1 + $0x28] sm:$0xff]  ;;  %v186_v11 = vld [vmem:[%s592_s1 + $0x20] sm:$0xff] }
   0xf   : > { %411 = vmatpush.msra.mxu2 %v196_v1  ;;  %412 = vmatpush.msra.mxu3 %v196_v1  ;;  %v185_v12 = vld [vmem:[%s592_s1 + $0x18] sm:$0xff]  ;;  %v184_v13 = vld [vmem:[%s592_s1 + $0x10] sm:$0xff]  ;;  %v183_v14 = vld [vmem:[%s592_s1 + $0x8] sm:$0xff] }
  0x10   : > { %204 = vmatpush.msra.mxu0 %v195_v2  ;;  %413 = vmatpush.msra.mxu1 %v195_v2  ;;  %v182_v15 = vld [vmem:[%s592_s1] sm:$0xff]  ;;  %v176_v17 = vld [vmem:[%s166_s22 + $0x10] sm:$0xff]  ;;  %v175_v20 = vld [vmem:[%s166_s22 + $0x8] sm:$0xff] }
  0x11   : > { %414 = vmatpush.msra.mxu2 %v195_v2  ;;  %415 = vmatpush.msra.mxu3 %v195_v2  ;;  %v174_v16 = vld [vmem:[%s166_s22] sm:$0xff]  ;;  %v180_v19 = vld [vmem:[%s166_s22 + $0x30] sm:$0xff]  ;;  %v177_v21 = vld [vmem:[%s166_s22 + $0x18] sm:$0xff] }
  0x12   : > { %205 = vmatpush.msra.mxu0 %v194_v3  ;;  %416 = vmatpush.msra.mxu1 %v194_v3  ;;  %v178_v18 = vld [vmem:[%s166_s22 + $0x20] sm:$0xff]  ;;  %v179_v22 = vld [vmem:[%s166_s22 + $0x28] sm:$0xff]  ;;  %v181_v23 = vld [vmem:[%s166_s22 + $0x38] sm:$0xff] }
  0x13   : > { %417 = vmatpush.msra.mxu2 %v194_v3  ;;  %418 = vmatpush.msra.mxu3 %v194_v3  ;;  %v465_v24 = vld [vmem:[%s593_s2] ss:$0 sm:$0xff] }
  0x14   : > { %206 = vmatpush.msra.mxu0 %v193_v4  ;;  %419 = vmatpush.msra.mxu1 %v193_v4 }
  0x15   : > { %420 = vmatpush.msra.mxu2 %v193_v4  ;;  %421 = vmatpush.msra.mxu3 %v193_v4 }
  0x16   : > { %207 = vmatpush.msra.mxu0 %v192_v5  ;;  %422 = vmatpush.msra.mxu1 %v192_v5 }
  0x17   : > { %423 = vmatpush.msra.mxu2 %v192_v5  ;;  %424 = vmatpush.msra.mxu3 %v192_v5 }
  0x18   : > { %208 = vmatpush.msra.mxu0 %v191_v6  ;;  %425 = vmatpush.msra.mxu1 %v191_v6 }
  0x19   : > { %426 = vmatpush.msra.mxu2 %v191_v6  ;;  %427 = vmatpush.msra.mxu3 %v191_v6 }
  0x1a   : > { %209 = vmatpush.msra.mxu0 %v190_v7  ;;  %428 = vmatpush.msra.mxu1 %v190_v7 }
  0x1b   : > { %429 = vmatpush.msra.mxu2 %v190_v7  ;;  %430 = vmatpush.msra.mxu3 %v190_v7 }
  0x1c   : > { %210 = vmatpush.msra.mxu0 %v189_v8  ;;  %431 = vmatpush.msra.mxu1 %v189_v8 }
  0x1d   : > { %432 = vmatpush.msra.mxu2 %v189_v8  ;;  %433 = vmatpush.msra.mxu3 %v189_v8 }
  0x1e   : > { %211 = vmatpush.msra.mxu0 %v188_v9  ;;  %434 = vmatpush.msra.mxu1 %v188_v9 }
  0x1f   : > { %435 = vmatpush.msra.mxu2 %v188_v9  ;;  %436 = vmatpush.msra.mxu3 %v188_v9 }
  0x20   : > { %212 = vmatpush.msra.mxu0 %v187_v10  ;;  %437 = vmatpush.msra.mxu1 %v187_v10 }
  0x21   : > { %438 = vmatpush.msra.mxu2 %v187_v10  ;;  %439 = vmatpush.msra.mxu3 %v187_v10 }
  0x22   : > { %213 = vmatpush.msra.mxu0 %v186_v11  ;;  %440 = vmatpush.msra.mxu1 %v186_v11 }
  0x23   : > { %441 = vmatpush.msra.mxu2 %v186_v11  ;;  %442 = vmatpush.msra.mxu3 %v186_v11 }
  0x24   : > { %214 = vmatpush.msra.mxu0 %v185_v12  ;;  %443 = vmatpush.msra.mxu1 %v185_v12 }
  0x25   : > { %444 = vmatpush.msra.mxu2 %v185_v12  ;;  %445 = vmatpush.msra.mxu3 %v185_v12 }
  0x26   : > { %215 = vmatpush.msra.mxu0 %v184_v13  ;;  %446 = vmatpush.msra.mxu1 %v184_v13 }
  0x27   : > { %447 = vmatpush.msra.mxu2 %v184_v13  ;;  %448 = vmatpush.msra.mxu3 %v184_v13 }
  0x28   : > { %216 = vmatpush.msra.mxu0 %v183_v14  ;;  %449 = vmatpush.msra.mxu1 %v183_v14 }
  0x29   : > { %450 = vmatpush.msra.mxu2 %v183_v14  ;;  %451 = vmatpush.msra.mxu3 %v183_v14 }
  0x2a   : > { %217 = vmatpush.msra.mxu0 %v182_v15  ;;  %452 = vmatpush.msra.mxu1 %v182_v15 }
  0x2b   : > { %453 = vmatpush.msra.mxu2 %v182_v15  ;;  %218 = vmatmul.f32.vlgmr.msra.gmra.mxu0 %v174_v16 }
  0x2c   : > { %224 = vmatmul.f32.vlgmr.msra.gmra.mxu1 %v176_v17  ;;  %230 = vmatmul.f32.vlgmr.msra.gmra.mxu2 %v178_v18 }
  0x2d   : > { %454 = vmatpush.msra.mxu3 %v182_v15 }
  0x2e   : > { %236 = vmatmul.f32.vlgmr.msra.gmra.mxu3 %v180_v19 }
  0x33   : > { %221 = vmatmul.f32.gmra.mxu0 %v175_v20 }
  0x34   : > { %227 = vmatmul.f32.gmra.mxu1 %v177_v21  ;;  %233 = vmatmul.f32.gmra.mxu2 %v179_v22 }
  0x36   : > { %239 = vmatmul.f32.gmra.mxu3 %v181_v23 }
  0xa8   : > { %v219_v25 = vpop.f32.mrf.mxu0 }
  0xa9   : > { %v220_v26 = vadd.f32 %v465_v24, %v219_v25  ;;  %v225_v27 = vpop.f32.mrf.mxu1 }
  0xaa   : > { %v226_v28 = vadd.f32 %v465_v24, %v225_v27 }
  0xab   : > { %251 = vrot.lane.b32.xlu0 %v220_v26, %s474_s27 }
  0xac   : > { %255 = vrot.lane.b32.xlu1 %v226_v28, %s474_s27 }
  0xaf   : > { %v231_v29 = vpop.f32.mrf.mxu2 }
  0xb0   : > { %v232_v30 = vadd.f32 %v465_v24, %v231_v29  ;;  %v222_v31 = vpop.f32.mrf.mxu0 }
  0xb1   : > { %v223_v32 = vadd.f32 %v465_v24, %v222_v31  ;;  %v228_v33 = vpop.f32.mrf.mxu1  ;;  %v237_v34 = vpop.f32.mrf.mxu3 }
  0xb2   : > { %v229_v35 = vadd.f32 %v465_v24, %v228_v33  ;;  %259 = vrot.lane.b32.xlu2 %v232_v30, %s474_s27  ;;  %v238_v38 = vadd.f32 %v465_v24, %v237_v34 }
  0xb3   : > { %253 = vrot.lane.b32.xlu0 %v223_v32, %s474_s27 }
  0xb4   : > { %257 = vrot.lane.b32.xlu1 %v229_v35, %s474_s27 }
  0xb7   : > { %v234_v36 = vpop.f32.mrf.mxu2 }
  0xb8   : > { %v235_v37 = vadd.f32 %v465_v24, %v234_v36 }
  0xb9   : > { %v240_v39 = vpop.f32.mrf.mxu3 }
  0xba   : > { %v241_v40 = vadd.f32 %v465_v24, %v240_v39  ;;  %261 = vrot.lane.b32.xlu2 %v235_v37, %s474_s27 }
  0xbb   : > { %263 = vrot.lane.b32.xlu0 %v238_v38, %s474_s27 }
  0xbc   : > { %265 = vrot.lane.b32.xlu1 %v241_v40, %s474_s27 }
 0x10c   : > { %v260_v41 = vpop.permute.xlu2 %259 }
 0x10d   : > { %v279_v42 = vmax.f32 %v232_v30, %v260_v41 }
 0x10f   : > { %299 = vrot.lane.b32.xlu0 %v279_v42, %s475_s28 }
 0x114   : > { %v262_v47 = vpop.permute.xlu2 %261 }
 0x115   : > { %v280_v51 = vmax.f32 %v235_v37, %v262_v47 }
 0x11d   : > { %v252_v43 = vpop.permute.xlu0 %251 }
 0x11e   : > { %v256_v44 = vpop.permute.xlu1 %255  ;;  %v275_v45 = vmax.f32 %v220_v26, %v252_v43 }
 0x11f   : > { %v277_v46 = vmax.f32 %v226_v28, %v256_v44 }
 0x120   : > { %291 = vrot.lane.b32.xlu2 %v275_v45, %s475_s28 }
 0x121   : > { %295 = vrot.lane.b32.xlu1 %v277_v46, %s475_s28 }
 0x125   : > { %v254_v48 = vpop.permute.xlu0 %253 }
 0x126   : > { %v258_v49 = vpop.permute.xlu1 %257  ;;  %v276_v50 = vmax.f32 %v223_v32, %v254_v48 }
 0x127   : > { %v278_v52 = vmax.f32 %v229_v35, %v258_v49 }
 0x128   : > { %293 = vrot.lane.b32.xlu0 %v276_v50, %s475_s28 }
 0x129   : > { %301 = vrot.lane.b32.xlu1 %v280_v51, %s475_s28  ;;  %297 = vrot.lane.b32.xlu2 %v278_v52, %s475_s28 }
 0x12d   : > { %v264_v53 = vpop.permute.xlu0 %263 }
 0x12e   : > { %v266_v54 = vpop.permute.xlu1 %265  ;;  %v281_v55 = vmax.f32 %v238_v38, %v264_v53 }
 0x12f   : > { %v282_v56 = vmax.f32 %v241_v40, %v266_v54 }
 0x131   : > { %305 = vrot.lane.b32.xlu0 %v282_v56, %s475_s28  ;;  %303 = vrot.lane.b32.xlu2 %v281_v55, %s475_s28 }
 0x17a   : > { %v292_v57 = vpop.permute.xlu2 %291 }
 0x17b   : > { %v315_v58 = vmax.f32 %v275_v45, %v292_v57 }
 0x17d   : > { %v323_v59 = vmax.f32 %v315_v58, 0.0 }
 0x17f   : > { %332 = vst.msk [vmem:[%s570_s5] sm:$0xff] %vm331_vm0, %v323_v59 }
 0x181   : > { %v300_v60 = vpop.permute.xlu0 %299 }
 0x182   : > { %v319_v61 = vmax.f32 %v279_v42, %v300_v60 }
 0x183   : > { %v298_v62 = vpop.permute.xlu2 %297 }
 0x184   : > { %v327_v63 = vmax.f32 %v319_v61, 0.0  ;;  %v318_v0 = vmax.f32 %v278_v52, %v298_v62 }
 0x186   : > { %336 = vst.msk [vmem:[%s570_s5 + $0x20] sm:$0xff] %vm331_vm0, %v327_v63  ;;  %v326_v1 = vmax.f32 %v318_v0, 0.0 }
 0x188   : > { %335 = vst.msk [vmem:[%s570_s5 + $0x18] sm:$0xff] %vm331_vm0, %v326_v1 }
 0x18b   : > { %v304_v2 = vpop.permute.xlu2 %303 }
 0x18c   : > { %v321_v3 = vmax.f32 %v281_v55, %v304_v2 }
 0x18e   : > { %v329_v4 = vmax.f32 %v321_v3, 0.0 }
 0x190   : > { %338 = vst.msk [vmem:[%s570_s5 + $0x30] sm:$0xff] %vm331_vm0, %v329_v4 }
 0x193   : > { %v296_v5 = vpop.permute.xlu1 %295 }
 0x194   : > { %v317_v6 = vmax.f32 %v277_v46, %v296_v5 }
 0x196   : > { %v325_v7 = vmax.f32 %v317_v6, 0.0 }
 0x198   : > { %334 = vst.msk [vmem:[%s570_s5 + $0x10] sm:$0xff] %vm331_vm0, %v325_v7 }
 0x19a   : > { %v294_v8 = vpop.permute.xlu0 %293 }
 0x19b   : > { %v302_v9 = vpop.permute.xlu1 %301  ;;  %v316_v10 = vmax.f32 %v276_v50, %v294_v8 }
 0x19c   : > { %v320_v11 = vmax.f32 %v280_v51, %v302_v9 }
 0x19d   : > { %v324_v12 = vmax.f32 %v316_v10, 0.0 }
 0x19e   : > { %v328_v13 = vmax.f32 %v320_v11, 0.0 }
 0x19f   : > { %333 = vst.msk [vmem:[%s570_s5 + $0x8] sm:$0xff] %vm331_vm0, %v324_v12 }
 0x1a0   : > { %337 = vst.msk [vmem:[%s570_s5 + $0x28] sm:$0xff] %vm331_vm0, %v328_v13 }
 0x1a3   : > { %v306_v14 = vpop.permute.xlu0 %305 }
 0x1a4   : > { %v322_v15 = vmax.f32 %v282_v56, %v306_v14 }
 0x1a6   : > { %v330_v16 = vmax.f32 %v322_v15, 0.0 }
 0x1a8   : > { %339 = vst.msk [vmem:[%s570_s5 + $0x38] sm:$0xff] %vm331_vm0, %v330_v16 }
 0x1a9 PF: > { %s13_s12 = sadd.s32 1, %s472_s12  }
 0x1aa   : > { %p10_p4 = scmp.ge.s32.totalorder %s13_s12, 4  }
 0x1ac   :  { %12 = sbr.rel (!%p10_p4) target bundleno = 1 (0x1), region = 62 }

</bundles_post_ra>
